<compile_context>
chip_gen: v7x
topology: tpu7x:2x2x1
jax: 0.10.0
libtpu: 0.0.40
codegen_flags: <defaults>
</compile_context>

<pallas_src>
import functools

import jax
import jax.numpy as jnp
from jax.experimental import pallas as pl
from jax.experimental.pallas import tpu as pltpu


VMEM_LIMIT = 48 * 1024 * 1024     # scoped-VMEM request (<= v7x's 64 MiB per-TC VMEM)
TILE_BUDGET = 40 * 1024 * 1024    # working-set budget used when picking GEMM tiles


# ---------------------------------------------------------------------------
# Tile selection helpers
# ---------------------------------------------------------------------------

def _tile_cands(dim, cands, prefer_full=False):
    """Candidate tile sizes for `dim`, largest first; always includes `dim` itself."""
    out = [dim] if prefer_full else []
    out += [c for c in cands if c <= dim and dim % c == 0]
    if dim not in out:
        out.append(dim)
    seen, uniq = set(), []
    for c in out:
        if c not in seen:
            seen.add(c)
            uniq.append(c)
    return uniq


def _mb_tiles(M, K, N, budget=TILE_BUDGET):
    """Tiles for matmul_bias.  Prefer tm == M (weights stream once) when M is small."""
    tms = _tile_cands(M, (512, 256, 128, 64, 32, 16, 8), prefer_full=(M <= 1024))
    tns = _tile_cands(N, (1024, 768, 512, 384, 256, 128))
    tks = _tile_cands(K, (1024, 768, 512, 384, 256, 128))

    def est(tm, tn, tk):
        # double-buffered bf16 x / w / out blocks + f32 accumulator + bias
        return 4 * (tm * tk + tk * tn + 2 * tm * tn) + 8 * tn

    for tm in tms:
        for tn in tns:
            for tk in tks:
                if est(tm, tn, tk) <= budget:
                    return tm, tn, tk
    return tms[-1], tns[-1], tks[-1]


def _mrl_tiles(M, K, N, budget=TILE_BUDGET):
    """Tiles for matmul_res_ln (output width is the full hidden size N)."""
    tms = _tile_cands(M, (512, 256, 128, 64, 32, 16, 8), prefer_full=(M <= 1024))
    tks = _tile_cands(K, (1024, 768, 512, 384, 256, 128))

    def est(tm, tk):
        # x + w + residual + out double buffers (bf16), f32 acc, bias/gamma/beta
        return 4 * tm * tk + 4 * tk * N + 8 * tm * N + 4 * tm * N + 24 * N

    for tm in tms:
        for tk in tks:
            if est(tm, tk) <= budget:
                return tm, tk
    return tms[-1], tks[-1]


def _pick_head_group(n_heads, dh):
    """Heads per attention grid step; prefer a 128-lane (then 256-lane) output block."""
    for target in (128, 256):
        g = target // dh if dh <= target else 0
        if g >= 1 and dh * g == target and n_heads % g == 0:
            return g
    return n_heads  # fall back: one group covering all heads (full-dim blocks, legal)


# ---------------------------------------------------------------------------
# Pallas kernels
# ---------------------------------------------------------------------------

def _gelu_tanh(x):
    # tanh-approx GELU (BERT intermediate activation); runs on EUP.
    return 0.5 * x * (1.0 + jnp.tanh(
        0.7978845608028654 * (x + 0.044715 * x * x * x)))


def _emb_ln_kernel(we_ref, te_ref, pe_ref, g_ref, b_ref, o_ref, *, eps):
    # fused: word + type + position embedding sum (f32) + LayerNorm, one row of the
    # flattened batch per grid point; nothing but the bf16 result touches HBM.
    x = (we_ref[...].astype(jnp.float32)
         + te_ref[...].astype(jnp.float32)
         + pe_ref[...].astype(jnp.float32)[None])        # (1, L, H) f32
    mean = jnp.mean(x, axis=-1, keepdims=True)
    cen = x - mean
    var = jnp.mean(cen * cen, axis=-1, keepdims=True)
    inv = jax.lax.rsqrt(var + eps)
    o_ref[...] = (cen * inv * g_ref[...] + b_ref[...]).astype(o_ref.dtype)


def emb_layernorm(word_g, type_g, pos_e, gamma, beta, eps=1e-12):
    """word_g/type_g: (Bf, L, H) bf16 gathers, pos_e: (L, H) bf16 -> (Bf, L, H) bf16."""
    Bf, L, H = word_g.shape
    return pl.pallas_call(
        functools.partial(_emb_ln_kernel, eps=eps),
        out_shape=jax.ShapeDtypeStruct((Bf, L, H), jnp.bfloat16),
        grid=(Bf,),
        in_specs=[pl.BlockSpec((1, L, H), lambda b: (b, 0, 0)),
                  pl.BlockSpec((1, L, H), lambda b: (b, 0, 0)),
                  pl.BlockSpec((L, H), lambda b: (0, 0)),
                  pl.BlockSpec((1, H), lambda b: (0, 0)),
                  pl.BlockSpec((1, H), lambda b: (0, 0))],
        out_specs=pl.BlockSpec((1, L, H), lambda b: (b, 0, 0)),
        compiler_params=pltpu.CompilerParams(
            dimension_semantics=("parallel",),
            vmem_limit_bytes=VMEM_LIMIT),
    )(word_g.astype(jnp.bfloat16), type_g.astype(jnp.bfloat16),
      pos_e.astype(jnp.bfloat16),
      gamma.reshape(1, H).astype(jnp.float32),
      beta.reshape(1, H).astype(jnp.float32))


def _qkv_attn_kernel(x_ref, w_ref, b_ref, m_ref, o_ref, *, L, H, dh, hg, scale):
    # Fused QKV projection + softmax attention for one (head-group, row) grid point.
    # MXU inputs stay bf16; accumulation / softmax math in f32.
    x = x_ref[...].reshape(L, H)                                        # bf16
    qkv = (jnp.dot(x, w_ref[...], preferred_element_type=jnp.float32)
           + b_ref[...])                                                # (L, 3*dh*hg) f32
    neg = (1.0 - m_ref[...].reshape(1, L)) * (-10000.0)                 # key-pad mask

    # TODO(synk): add flash-style q/k tiling inside this kernel if L grows beyond ~256.
    outs = []
    for hh in range(hg):                       # hg <= 2 for real head dims (bounded)
        base = hh * 3 * dh
        q = (qkv[:, base:base + dh] * scale).astype(jnp.bfloat16)
        k = qkv[:, base + dh:base + 2 * dh].astype(jnp.bfloat16)
        v = qkv[:, base + 2 * dh:base + 3 * dh].astype(jnp.bfloat16)
        s = jax.lax.dot_general(q, k, (((1,), (1,)), ((), ())),
                                preferred_element_type=jnp.float32) + neg
        s = s - jnp.max(s, axis=-1, keepdims=True)
        e = jnp.exp(s)
        p = (e * pl.reciprocal(jnp.sum(e, axis=-1, keepdims=True), approx=True)
             ).astype(jnp.bfloat16)
        outs.append(jnp.dot(p, v, preferred_element_type=jnp.float32))  # (L, dh) f32

    ctx = outs[0] if hg == 1 else jnp.concatenate(outs, axis=-1)        # (L, dh*hg)
    o_ref[...] = ctx.reshape(1, L, dh * hg).astype(o_ref.dtype)


def fused_qkv_attention(x, wqkv_hm, bqkv_hm, mask3, n_heads, scale):
    """x: (Bf, L, H) bf16, wqkv_hm: (H, 3H) head-major, mask3: (Bf, 1, L) f32
       -> (Bf, L, H) bf16 (heads concatenated in standard order)."""
    Bf, L, H = x.shape
    dh = H // n_heads
    hg = _pick_head_group(n_heads, dh)
    n_groups = n_heads // hg
    gw = 3 * dh * hg                  # weight / bias columns per head group
    ow = dh * hg                      # output columns per head group
    kern = functools.partial(_qkv_attn_kernel, L=L, H=H, dh=dh, hg=hg, scale=scale)
    # Grid: (group, row) with row innermost so the group's weight block is DMA'd once
    # and reused across all Bf rows (weights are the larger HBM stream in few-shot).
    return pl.pallas_call(
        kern,
        out_shape=jax.ShapeDtypeStruct((Bf, L, H), jnp.bfloat16),
        grid=(n_groups, Bf),
        in_specs=[pl.BlockSpec((1, L, H), lambda g, b: (b, 0, 0)),
                  pl.BlockSpec((H, gw), lambda g, b: (0, g)),
                  pl.BlockSpec((1, gw), lambda g, b: (0, g)),
                  pl.BlockSpec((1, 1, L), lambda g, b: (b, 0, 0))],
        out_specs=pl.BlockSpec((1, L, ow), lambda g, b: (b, 0, g)),
        compiler_params=pltpu.CompilerParams(
            dimension_semantics=("parallel", "parallel"),
            vmem_limit_bytes=VMEM_LIMIT),
    )(x.astype(jnp.bfloat16), wqkv_hm.astype(jnp.bfloat16),
      bqkv_hm.reshape(1, 3 * H).astype(jnp.float32),
      mask3.astype(jnp.float32))


def _matmul_bias_kernel(x_ref, w_ref, b_ref, o_ref, acc_ref, *, activation, n_k):
    @pl.when(pl.program_id(2) == 0)
    def _():
        acc_ref[...] = jnp.zeros_like(acc_ref)

    acc_ref[...] += jnp.dot(x_ref[...], w_ref[...],
                            preferred_element_type=jnp.float32)

    @pl.when(pl.program_id(2) == n_k - 1)
    def _():
        acc = acc_ref[...] + b_ref[...]          # bias added once, in finalize
        if activation == "gelu":
            acc = _gelu_tanh(acc)
        o_ref[...] = acc.astype(o_ref.dtype)


def matmul_bias(x, w, b, activation="none"):
    """x: (M, K) bf16  w: (K, N) bf16  b: (N,) f32 -> (M, N) bf16, f32 accumulate."""
    M, K = x.shape
    N = w.shape[1]
    tm, tn, tk = _mb_tiles(M, K, N)
    n_k = K // tk
    kern = functools.partial(_matmul_bias_kernel, activation=activation, n_k=n_k)
    return pl.pallas_call(
        kern,
        out_shape=jax.ShapeDtypeStruct((M, N), jnp.bfloat16),
        grid=(M // tm, N // tn, n_k),
        in_specs=[pl.BlockSpec((tm, tk), lambda i, j, k: (i, k)),
                  pl.BlockSpec((tk, tn), lambda i, j, k: (k, j)),
                  pl.BlockSpec((1, tn), lambda i, j, k: (0, j))],
        out_specs=pl.BlockSpec((tm, tn), lambda i, j, k: (i, j)),
        scratch_shapes=[pltpu.VMEM((tm, tn), jnp.float32)],
        compiler_params=pltpu.CompilerParams(
            dimension_semantics=("parallel", "parallel", "arbitrary"),
            vmem_limit_bytes=VMEM_LIMIT),
    )(x.astype(jnp.bfloat16), w.astype(jnp.bfloat16),
      b.reshape(1, N).astype(jnp.float32))


def _matmul_res_ln_kernel(x_ref, w_ref, b_ref, res_ref, g_ref, beta_ref,
                          o_ref, acc_ref, *, n_k, eps):
    @pl.when(pl.program_id(1) == 0)
    def _():
        acc_ref[...] = jnp.zeros_like(acc_ref)

    acc_ref[...] += jnp.dot(x_ref[...], w_ref[...],
                            preferred_element_type=jnp.float32)

    @pl.when(pl.program_id(1) == n_k - 1)
    def _():
        # fused: bias + residual add + LayerNorm over the full hidden axis
        y = acc_ref[...] + b_ref[...] + res_ref[...].astype(jnp.float32)
        mean = jnp.mean(y, axis=-1, keepdims=True)
        cen = y - mean
        var = jnp.mean(cen * cen, axis=-1, keepdims=True)
        inv = jax.lax.rsqrt(var + eps)
        o_ref[...] = (cen * inv * g_ref[...] + beta_ref[...]).astype(o_ref.dtype)


def matmul_res_ln(x, w, b, residual, gamma, beta, eps=1e-12):
    """(x @ w + b + residual) -> LayerNorm, fused in one pallas_call.  N == hidden."""
    M, K = x.shape
    N = w.shape[1]
    tm, tk = _mrl_tiles(M, K, N)
    n_k = K // tk
    kern = functools.partial(_matmul_res_ln_kernel, n_k=n_k, eps=eps)
    return pl.pallas_call(
        kern,
        out_shape=jax.ShapeDtypeStruct((M, N), jnp.bfloat16),
        grid=(M // tm, n_k),
        in_specs=[pl.BlockSpec((tm, tk), lambda i, k: (i, k)),
                  pl.BlockSpec((tk, N), lambda i, k: (k, 0)),
                  pl.BlockSpec((1, N), lambda i, k: (0, 0)),
                  pl.BlockSpec((tm, N), lambda i, k: (i, 0)),
                  pl.BlockSpec((1, N), lambda i, k: (0, 0)),
                  pl.BlockSpec((1, N), lambda i, k: (0, 0))],
        out_specs=pl.BlockSpec((tm, N), lambda i, k: (i, 0)),
        scratch_shapes=[pltpu.VMEM((tm, N), jnp.float32)],
        compiler_params=pltpu.CompilerParams(
            dimension_semantics=("parallel", "arbitrary"),
            vmem_limit_bytes=VMEM_LIMIT),
    )(x.astype(jnp.bfloat16), w.astype(jnp.bfloat16),
      b.reshape(1, N).astype(jnp.float32),
      residual.astype(jnp.bfloat16),
      gamma.reshape(1, N).astype(jnp.float32),
      beta.reshape(1, N).astype(jnp.float32))


# ---------------------------------------------------------------------------
# Synthetic mini-BERT built from the Pallas kernels
# ---------------------------------------------------------------------------

def _normal(key, shape, std=0.02, dtype=jnp.bfloat16):
    return (std * jax.random.normal(key, shape, dtype=jnp.float32)).astype(dtype)


def init_bert_params(key, *, vocab_size, hidden, n_layers, n_heads, intermediate,
                     max_pos, type_vocab):
    dh = hidden // n_heads
    keys = iter(jax.random.split(key, 4 + 4 * n_layers))
    params = {
        "word_emb": _normal(next(keys), (vocab_size, hidden)),
        "pos_emb": _normal(next(keys), (max_pos, hidden)),
        "type_emb": _normal(next(keys), (type_vocab, hidden)),
        "emb_ln_g": jnp.ones((hidden,), jnp.float32),
        "emb_ln_b": jnp.zeros((hidden,), jnp.float32),
        "layers": [],
    }
    for _ in range(n_layers):
        layer = {
            # Q|K|V weights stored head-major: (H, n_heads, 3, dh) flattened to (H, 3H)
            # so one head-group's q/k/v columns form a single contiguous block that the
            # fused attention kernel streams per grid step (equivalent to three separate
            # projections with standard head-concat output ordering).
            "wqkv_hm": _normal(next(keys), (hidden, n_heads, 3, dh)
                               ).reshape(hidden, 3 * hidden),
            "bqkv_hm": jnp.zeros((3 * hidden,), jnp.float32),
            "wo": _normal(next(keys), (hidden, hidden)),
            "bo": jnp.zeros((hidden,), jnp.float32),
            "ln1_g": jnp.ones((hidden,), jnp.float32),
            "ln1_b": jnp.zeros((hidden,), jnp.float32),
            "wi": _normal(next(keys), (hidden, intermediate)),
            "bi": jnp.zeros((intermediate,), jnp.float32),
            "wf": _normal(next(keys), (intermediate, hidden)),
            "bf": jnp.zeros((hidden,), jnp.float32),
            "ln2_g": jnp.ones((hidden,), jnp.float32),
            "ln2_b": jnp.zeros((hidden,), jnp.float32),
        }
        params["layers"].append(layer)
    return params


def bert_forward(params, n_heads, input_ids, segment_ids, input_mask):
    """Returns the last-layer sequence output, shape (Bflat, L, H) in bfloat16."""
    Bf, L = input_ids.shape
    H = params["word_emb"].shape[1]
    dh = H // n_heads
    scale = 1.0 / (dh ** 0.5)

    # Gathers stay in JAX glue; sum + LayerNorm are fused in one Pallas kernel.
    word_g = jnp.take(params["word_emb"], input_ids, axis=0)        # (Bf, L, H) bf16
    type_g = jnp.take(params["type_emb"], segment_ids, axis=0)      # (Bf, L, H) bf16
    pos_e = params["pos_emb"][:L]                                    # (L, H) bf16
    x3 = emb_layernorm(word_g, type_g, pos_e,
                       params["emb_ln_g"], params["emb_ln_b"])       # (Bf, L, H) bf16
    mask3 = input_mask.astype(jnp.float32).reshape(Bf, 1, L)

    for lyr in params["layers"]:
        # fused QKV projection + attention (no (M, 3H) slab written to HBM)
        ctx = fused_qkv_attention(x3, lyr["wqkv_hm"], lyr["bqkv_hm"],
                                  mask3, n_heads, scale)             # (Bf, L, H)
        # output projection fused with residual add + LayerNorm
        x2 = matmul_res_ln(ctx.reshape(Bf * L, H), lyr["wo"], lyr["bo"],
                           x3.reshape(Bf * L, H), lyr["ln1_g"], lyr["ln1_b"])
        # FFN: intermediate GEMM with fused GELU, then output GEMM fused with
        # residual add + LayerNorm
        inter = matmul_bias(x2, lyr["wi"], lyr["bi"], activation="gelu")
        x2 = matmul_res_ln(inter, lyr["wf"], lyr["bf"], x2,
                           lyr["ln2_g"], lyr["ln2_b"])
        x3 = x2.reshape(Bf, L, H)
    return x3


# ---------------------------------------------------------------------------
# BertContextEmbedder forward semantics
# ---------------------------------------------------------------------------

class BertContextEmbedderPallas:
    def __init__(self, bert_params, n_heads, key):
        self.bert_params = bert_params
        self.n_heads = n_heads
        h = bert_params["word_emb"].shape[1]
        # feature_maps = nn.Linear(h*2, h): constructed in the torch __init__ but never
        # applied in forward(); initialized here only for parameter parity.
        self.feature_maps_w = _normal(key, (2 * h, h))
        self.feature_maps_b = jnp.zeros((h,), jnp.float32)

    def __call__(self, query_set, support_set=None):
        if support_set is not None:
            return self.concatenating_reps(query_set, support_set)
        return self.single_reps(query_set)

    @staticmethod
    def _expand_it(item, support_size):
        return jnp.broadcast_to(item[:, None, ...],
                                (item.shape[0], support_size) + item.shape[1:])

    @staticmethod
    def _extract_non_word_piece_reps(reps, index):
        # torch.gather(reps, dim=-2, index=index.expand(..., hidden))
        idx = jnp.broadcast_to(index, index.shape[:-1] + (reps.shape[-1],))
        return jnp.take_along_axis(reps, idx, axis=-2)

    def concatenating_reps(self, query_set, support_set):
        test_token_ids = query_set["token_ids"]
        test_nwp_index = query_set["wp_mask"]
        test_segment_ids = query_set["segment_ids"]
        test_input_mask = query_set["input_mask"]
        support_token_ids = support_set["token_ids"]
        support_nwp_index = support_set["wp_mask"]
        support_segment_ids = support_set["segment_ids"]
        support_input_mask = support_set["input_mask"]

        support_size = support_token_ids.shape[1]
        test_len = test_token_ids.shape[-1] - 2
        support_len = support_token_ids.shape[-1] - 1
        batch_size = support_token_ids.shape[0]

        # expand test items to (batch, support_size, ...)
        test_token_ids = self._expand_it(test_token_ids, support_size)
        test_segment_ids = self._expand_it(test_segment_ids, support_size)
        test_input_mask = self._expand_it(test_input_mask, support_size)
        test_nwp_index = self._expand_it(test_nwp_index, support_size)

        # concat test and support along the sequence axis
        input_ids = jnp.concatenate([test_token_ids, support_token_ids], axis=-1)
        segment_ids = jnp.concatenate([test_segment_ids, support_segment_ids], axis=-1)
        input_mask = jnp.concatenate([test_input_mask, support_input_mask], axis=-1)

        # flatten to (batch * support_size, sent_len)
        sent_len = input_ids.shape[-1]
        input_ids = input_ids.reshape(-1, sent_len)
        segment_ids = segment_ids.reshape(-1, sent_len)
        input_mask = input_mask.reshape(-1, sent_len)

        test_nwp_index = test_nwp_index.reshape(-1, test_nwp_index.shape[-1], 1)
        support_nwp_index = support_nwp_index.reshape(-1, support_nwp_index.shape[-1], 1)

        sequence_output = bert_forward(self.bert_params, self.n_heads,
                                       input_ids, segment_ids, input_mask)

        # narrow + gather first-word-piece representations
        test_reps = sequence_output[:, 1:1 + test_len, :]
        support_reps = sequence_output[:, 2 + test_len:2 + test_len + support_len, :]
        test_reps = self._extract_non_word_piece_reps(test_reps, test_nwp_index)
        support_reps = self._extract_non_word_piece_reps(support_reps, support_nwp_index)

        reps_size = test_reps.shape[-1]
        test_reps = test_reps.reshape(batch_size, support_size, -1, reps_size)
        support_reps = support_reps.reshape(batch_size, support_size, -1, reps_size)
        return test_reps, support_reps

    def single_reps(self, query_set):
        test_token_ids = query_set["token_ids"]
        test_nwp_index = query_set["wp_mask"]
        test_segment_ids = query_set["segment_ids"]
        test_input_mask = query_set["input_mask"]
        test_len = test_token_ids.shape[-1] - 2

        seq_out = bert_forward(self.bert_params, self.n_heads,
                               test_token_ids, test_segment_ids, test_input_mask)
        test_reps = seq_out[:, 1:1 + test_len, :]
        idx = test_nwp_index.reshape(test_nwp_index.shape[0], -1, 1)
        return self._extract_non_word_piece_reps(test_reps, idx)


# ---------------------------------------------------------------------------
# Demo
# ---------------------------------------------------------------------------

if __name__ == "__main__":
    B, S = 2, 2            # batch, support_size
    Lt, Ls = 8, 8          # test / support (word-piece) sequence lengths
    It, Is = 4, 5          # non-word-piece index lengths
    vocab, hidden, n_layers, n_heads, inter = 30, 32, 2, 2, 64
    test_len = Lt - 2
    support_len = Ls - 1

    bert_params = init_bert_params(
        jax.random.PRNGKey(42), vocab_size=vocab, hidden=hidden, n_layers=n_layers,
        n_heads=n_heads, intermediate=inter, max_pos=64, type_vocab=2)
    embedder = BertContextEmbedderPallas(bert_params, n_heads, jax.random.PRNGKey(7))

    key = jax.random.PRNGKey(0)
    ks = jax.random.split(key, 4)
    query_set = {
        "token_ids": jax.random.randint(ks[0], (B, Lt), 0, vocab, dtype=jnp.int32),
        "segment_ids": jnp.zeros((B, Lt), jnp.int32),
        "input_mask": jnp.ones((B, Lt), jnp.int32),
        "wp_mask": jax.random.randint(ks[1], (B, It), 0, test_len, dtype=jnp.int32),
    }
    support_set = {
        "token_ids": jax.random.randint(ks[2], (B, S, Ls), 0, vocab, dtype=jnp.int32),
        "segment_ids": jnp.ones((B, S, Ls), jnp.int32),
        "input_mask": jnp.ones((B, S, Ls), jnp.int32),
        "wp_mask": jax.random.randint(ks[3], (B, S, Is), 0, support_len, dtype=jnp.int32),
    }

    # concatenating path (query + support)
    test_reps, support_reps = embedder(query_set, support_set)
    # single-sentence path (query only)
    single_reps = embedder(query_set)

    jax.block_until_ready((test_reps, support_reps, single_reps))
    assert test_reps.shape == (B, S, It, hidden)
    assert support_reps.shape == (B, S, Is, hidden)
    assert single_reps.shape == (B, It, hidden)
    print("KERNEL_OK")
</pallas_src>

<mosaic_0001>
module attributes {stable_mosaic.version = 11 : i64} {
  func.func @_emb_ln_kernel(%arg0: i32, %arg1: memref<1x16x32xbf16, #tpu.memory_space<vmem>>, %arg2: memref<1x16x32xbf16, #tpu.memory_space<vmem>>, %arg3: memref<16x32xbf16, #tpu.memory_space<vmem>>, %arg4: memref<1x32xf32, #tpu.memory_space<vmem>>, %arg5: memref<1x32xf32, #tpu.memory_space<vmem>>, %arg6: memref<1x16x32xbf16, #tpu.memory_space<vmem>>) attributes {dimension_semantics = [#tpu.dimension_semantics<parallel>], iteration_bounds = array<i64: 4>, scalar_prefetch = 0 : i64, scratch_operands = 0 : i64, tpu.core_type = #tpu.core_type<tc>, window_params = [{transform_indices = @transform_0, window_bounds = array<i64: 1, 16, 32>}, {transform_indices = @transform_1, window_bounds = array<i64: 1, 16, 32>}, {pipeline_mode = #tpu.pipeline_mode<synchronous>, transform_indices = @transform_2, window_bounds = array<i64: 16, 32>}, {pipeline_mode = #tpu.pipeline_mode<synchronous>, transform_indices = @transform_3, window_bounds = array<i64: 1, 32>}, {pipeline_mode = #tpu.pipeline_mode<synchronous>, transform_indices = @transform_4, window_bounds = array<i64: 1, 32>}, {transform_indices = @transform_5, window_bounds = array<i64: 1, 16, 32>}]} {
    %c0 = arith.constant 0 : index
    %c0_0 = arith.constant 0 : index
    %c0_1 = arith.constant 0 : index
    %0 = vector.load %arg1[%c0, %c0_0, %c0_1] : memref<1x16x32xbf16, #tpu.memory_space<vmem>>, vector<1x16x32xbf16>
    %1 = arith.extf %0 : vector<1x16x32xbf16> to vector<1x16x32xf32>
    %c0_2 = arith.constant 0 : index
    %c0_3 = arith.constant 0 : index
    %c0_4 = arith.constant 0 : index
    %2 = vector.load %arg2[%c0_2, %c0_3, %c0_4] : memref<1x16x32xbf16, #tpu.memory_space<vmem>>, vector<1x16x32xbf16>
    %3 = arith.extf %2 : vector<1x16x32xbf16> to vector<1x16x32xf32>
    %4 = arith.addf %1, %3 : vector<1x16x32xf32>
    %c0_5 = arith.constant 0 : index
    %c0_6 = arith.constant 0 : index
    %5 = vector.load %arg3[%c0_5, %c0_6] : memref<16x32xbf16, #tpu.memory_space<vmem>>, vector<16x32xbf16>
    %6 = arith.extf %5 : vector<16x32xbf16> to vector<16x32xf32>
    %7 = vector.shape_cast %6 : vector<16x32xf32> to vector<1x16x32xf32>
    %8 = arith.addf %4, %7 : vector<1x16x32xf32>
    %cst = arith.constant dense<0.000000e+00> : vector<1x16xf32>
    %9 = vector.multi_reduction <add>, %8, %cst [2] : vector<1x16x32xf32> to vector<1x16xf32>
    %10 = vector.shape_cast %9 : vector<1x16xf32> to vector<1x16x1xf32>
    %cst_7 = arith.constant 3.200000e+01 : f32
    %11 = vector.broadcast %cst_7 : f32 to vector<1x16x1xf32>
    %12 = arith.divf %10, %11 : vector<1x16x1xf32>
    %13 = vector.broadcast %12 : vector<1x16x1xf32> to vector<1x16x32xf32>
    %14 = arith.subf %8, %13 : vector<1x16x32xf32>
    %15 = arith.mulf %14, %14 : vector<1x16x32xf32>
    %cst_8 = arith.constant dense<0.000000e+00> : vector<1x16xf32>
    %16 = vector.multi_reduction <add>, %15, %cst_8 [2] : vector<1x16x32xf32> to vector<1x16xf32>
    %17 = vector.shape_cast %16 : vector<1x16xf32> to vector<1x16x1xf32>
    %cst_9 = arith.constant 3.200000e+01 : f32
    %18 = vector.broadcast %cst_9 : f32 to vector<1x16x1xf32>
    %19 = arith.divf %17, %18 : vector<1x16x1xf32>
    %cst_10 = arith.constant 9.99999996E-13 : f32
    %20 = vector.broadcast %cst_10 : f32 to vector<1x16x1xf32>
    %21 = arith.addf %19, %20 : vector<1x16x1xf32>
    %22 = math.rsqrt %21 : vector<1x16x1xf32>
    %23 = vector.broadcast %22 : vector<1x16x1xf32> to vector<1x16x32xf32>
    %24 = arith.mulf %14, %23 : vector<1x16x32xf32>
    %c0_11 = arith.constant 0 : index
    %c0_12 = arith.constant 0 : index
    %25 = vector.load %arg4[%c0_11, %c0_12] : memref<1x32xf32, #tpu.memory_space<vmem>>, vector<1x32xf32>
    %26 = vector.shape_cast %25 : vector<1x32xf32> to vector<1x1x32xf32>
    %27 = vector.broadcast %26 : vector<1x1x32xf32> to vector<1x16x32xf32>
    %28 = arith.mulf %24, %27 : vector<1x16x32xf32>
    %c0_13 = arith.constant 0 : index
    %c0_14 = arith.constant 0 : index
    %29 = vector.load %arg5[%c0_13, %c0_14] : memref<1x32xf32, #tpu.memory_space<vmem>>, vector<1x32xf32>
    %30 = vector.shape_cast %29 : vector<1x32xf32> to vector<1x1x32xf32>
    %31 = vector.broadcast %30 : vector<1x1x32xf32> to vector<1x16x32xf32>
    %32 = arith.addf %28, %31 : vector<1x16x32xf32>
    %33 = arith.truncf %32 : vector<1x16x32xf32> to vector<1x16x32xbf16>
    %c0_15 = arith.constant 0 : index
    %c0_16 = arith.constant 0 : index
    %c0_17 = arith.constant 0 : index
    %34 = vector.load %arg6[%c0_15, %c0_16, %c0_17] : memref<1x16x32xbf16, #tpu.memory_space<vmem>>, vector<1x16x32xbf16>
    tpu.vector_store %arg6[%c0_15, %c0_16, %c0_17], %33 {strides = array<i32>} : memref<1x16x32xbf16, #tpu.memory_space<vmem>>, vector<1x16x32xbf16>,
    return
  }
  func.func @transform_0(%arg0: i32) -> (i32, i32, i32) {
    %c0_i32 = arith.constant 0 : i32
    %c0_i32_0 = arith.constant 0 : i32
    %c0_i32_1 = arith.constant 0 : i32
    return %arg0, %c0_i32, %c0_i32_0 : i32, i32, i32
  }
  func.func @transform_1(%arg0: i32) -> (i32, i32, i32) {
    %c0_i32 = arith.constant 0 : i32
    %c0_i32_0 = arith.constant 0 : i32
    %c0_i32_1 = arith.constant 0 : i32
    return %arg0, %c0_i32, %c0_i32_0 : i32, i32, i32
  }
  func.func @transform_2(%arg0: i32) -> (i32, i32) {
    %c0_i32 = arith.constant 0 : i32
    %c0_i32_0 = arith.constant 0 : i32
    %c0_i32_1 = arith.constant 0 : i32
    return %c0_i32, %c0_i32_0 : i32, i32
  }
  func.func @transform_3(%arg0: i32) -> (i32, i32) {
    %c0_i32 = arith.constant 0 : i32
    %c0_i32_0 = arith.constant 0 : i32
    %c0_i32_1 = arith.constant 0 : i32
    return %c0_i32, %c0_i32_0 : i32, i32
  }
  func.func @transform_4(%arg0: i32) -> (i32, i32) {
    %c0_i32 = arith.constant 0 : i32
    %c0_i32_0 = arith.constant 0 : i32
    %c0_i32_1 = arith.constant 0 : i32
    return %c0_i32, %c0_i32_0 : i32, i32
  }
  func.func @transform_5(%arg0: i32) -> (i32, i32, i32) {
    %c0_i32 = arith.constant 0 : i32
    %c0_i32_0 = arith.constant 0 : i32
    %c0_i32_1 = arith.constant 0 : i32
    return %arg0, %c0_i32, %c0_i32_0 : i32, i32, i32
  }
}

</mosaic_0001>

<bundles_post_ra>
// kernel: tpu_custom_call.1
= control target key start
LH: loop header
LB: loop body
LE: loop exit
PB: predicated region body
PF: predicated region fallthrough
CT: control target
= control target key end

     0   :  { %s1061_s0 = inlined_call_operand.hbm [shape: bf16[4,16,32], index: 0, kind: input, shape index: {}]   ;;  %s1062_s1 = inlined_call_operand.hbm [shape: bf16[4,16,32], index: 1, kind: input, shape index: {}]   ;;  %s1063_s2 = inlined_call_operand.hbm [shape: bf16[16,32], index: 2, kind: input, shape index: {}]   ;;  %s1064_s3 = inlined_call_operand.vmem [shape: f32[1,32], index: 3, kind: input, shape index: {}]   ;;  %s1065_s4 = inlined_call_operand.vmem [shape: f32[1,32], index: 4, kind: input, shape index: {}]   ;;  %s1066_s5 = inlined_call_operand.hbm [shape: bf16[4,16,32], index: 5, kind: output, shape index: {}]  }
   0x1   :  { %1075 = sst [smem:[#allocation15_spill]] %s1061_s0 }
   0x2   :  { %1076 = sst [smem:[#allocation16_spill]] %s1063_s2 }
   0x3   :  { %10 = vsyncpa [#allocation3], 0 }
   0x4   :  { %12 = vsyncpa [#allocation3 + $0x1], 0 }
   0x5   :  { %13 = vsyncpa [#allocation6], 0 }
   0x6   :  { %15 = vsyncpa [#allocation6 + $0x1], 0 }
   0x7   :  { %16 = vsyncpa [#allocation4], 0 }
   0x8   :  { %18 = vsyncpa [#allocation4 + $0x1], 0  ;;  %s802_s18 = smov 0   ;;  %s804_s19 = smov 0  }
   0x9   :  { %s806_s20 = smov 0   ;;  %s808_s21 = smov 0  }
   0xa LB: > { %1077 = sst [smem:[#allocation13_spill]] %s758_s20  ;;  %s823_s22 = sadd.s32 4294967295, %s762_s21   ;;  %s762_s21 = sphi %s808_s21, %s1099_s21   ;;  %s758_s20 = sphi %s806_s20, %s1096_s20   ;;  %s754_s19 = sphi %s804_s19, %s1098_s19   ;;  %s750_s18 = sphi %s802_s18, %s1097_s18  }
   0xb   : > { %s489_s23 = sadd.s32 4294967294, %s762_s21   ;;  %p44_p0 = scmp.ne.s32.totalorder %s754_s19, %s750_s18 }
   0xc   : > { %p1067_p1 = scmp.eq.s32.totalorder %s823_s22, 0  ;;  %p163_p3 = scmp.eq.s32.totalorder %s489_s23, 3 }
   0xd   : > { %p490_p5 = scmp.ge.s32.totalorder %s762_s21, 1  ;;  %p170_p7 = scmp.lt.s32.totalorder %s762_s21, 5 }
   0xe   : > { %p832_p4 = por %p1067_p1, %p44_p0  ;;  %p837_p6 = por %p163_p3, %p44_p0 }
   0xf   : > { %p842_p8 = pnand %p490_p5, %p170_p7  ;;  %s764_s27 = smov [#allocation7]  }
  0x10   : > { %s1078_s24 = scalar_select %p832_p4, 1, 0 }
  0x11   : > { %s1079_s25 = scalar_select %p837_p6, 1, 0 }
  0x12   : > { %s1080_s26 = scalar_select %p842_p8, 1, 0 }
  0x13   : > { %s182_s28 = sshll.u32 %s764_s27, 4  ;;  %p540_p9 = pneg %p842_p8  ;;  %s183_s28 = int_to_ptr.vmem [resolvable:$true] %s182_s28 }
  0x14   : > { %s855_s30 = sadd.s32 1, %s762_s21   ;;  %s31_s6 = sadd.s32 1, %s758_s20 }
  0x15   : > { %p850_p10 = pnand %p540_p9, %p1067_p1  ;;  %s28_s7 = ssub.s32 %s762_s21, %s855_s30 }
  0x16   : > { %s1082_s2 = sld [smem:[#allocation16_spill]] }
  0x17   : > { %p602_p12 = pneg %p850_p10 }
  0x1c   : > { %s600_s10 = scalar_lea.hbm %s1082_s2, 128 }
  0x1d   : > { %p601_p11 = scmp.ne.s32.totalorder %s1082_s2, %s600_s10  ;;  %p607_p3 = scmp.lt.u32.totalorder %s600_s10, %s1082_s2 }
  0x1f   : > { %p603_p13 = pnand %p602_p12, %p601_p11 }
  0x21   : > { %p604_p0 = pneg %p603_p13 }
  0x23   : > { %p609_p5 = pnand %p607_p3, %p604_p0 }
  0x25   : > { %612 = shalt.err (!%p609_p5)
}
  0x26   : > { %s613_s15 = scalar_lea.vmem %s183_s28, 128  ;;  %p621_p2 = scmp.lt.s32.totalorder %s183_s28, %s183_s28 }
  0x27   : > { %p614_p7 = scmp.ne.s32.totalorder %s183_s28, %s613_s15  ;;  %p622_p6 = scmp.lt.s32.totalorder %s613_s15, %s613_s15 }
  0x29   : > { %p616_p9 = pnand %p614_p7, %p602_p12  ;;  %p623_p4 = por %p622_p6, %p621_p2 }
  0x2b   : > { %p617_p1 = pneg %p616_p9 }
  0x2d   : > { %p624_p8 = pnand %p623_p4, %p617_p1 }
  0x2f   : > { %627 = shalt.err (!%p624_p8)
}
  0x30   : > { %s1070_s16 = smov 64   ;;  %s1072_s17 = smov 4  }
  0x31   : > { %543 = dma.hbm_to_vmem [thread:$0]  (!%p850_p10), %s1082_s2, 128, %s183_s28, [#allocation6], %s1070_s16, %s1070_s16, %s1072_s17  }
  0x32   : > { %p29_p1 = scmp.eq.s32.totalorder %s28_s7, 0  ;;  %p38_p2 = scmp.ne.s32.totalorder %s758_s20, %s754_s19 }
  0x33   : > { %p39_p4 = scmp.eq.s32.totalorder %s762_s21, 0  ;;  %p556_p6 = scmp.lt.s32.totalorder %s762_s21, 4 }
  0x34   : > { %s884_s8 = scalar_select %p29_p1, %s758_s20, %s31_s6  }
  0x35   : > { %p40_p8 = por %p39_p4, %p38_p2  ;;  %p1084_p11 = scmp.eq.s32.totalorder %s823_s22, 3 }
  0x36   : > { %1083 = sst [smem:[#allocation14_spill]] %s884_s8  ;;  %s202_s29 = sand.u32 1, %s758_s20  }
  0x37   : > { %p888_p12 = por %p1084_p11, %p38_p2  ;;  %s513_s10 = sshll.u32 %s762_s21, 7 }
  0x38   : > { %s894_s11 = sshll.u32 %s202_s29, 3  ;;  %s1086_s0 = sld [smem:[#allocation15_spill]] }
  0x39   : > { %s206_s6 = scalar_lea.vmem [#allocation2], %s894_s11  ;;  %p902_p10 = pnand %p556_p6, %p40_p8 }
  0x3a   : > { %s213_s7 = sshll.u32 %s206_s6, 4  ;;  %s911_s27 = scalar_lea.hbm %s1062_s1, %s513_s10  ;;  %s906_s7 = int_to_ptr.vmem [resolvable:$true] %s213_s7 }
  0x3b   : > { %s913_s12 = scalar_lea.sflag [#allocation3], %s202_s29  ;;  %p630_p0 = pneg %p902_p10 }
  0x3e   : > { %s899_s28 = scalar_lea.hbm %s1086_s0, %s513_s10  ;;  %s633_s17 = scalar_lea.hbm %s1086_s0, 512 }
  0x3f   : > { %s628_s13 = scalar_lea.hbm %s899_s28, 128  ;;  %p634_p7 = scmp.lt.u32.totalorder %s899_s28, %s1086_s0 }
  0x40   : > { %p629_p13 = scmp.ne.s32.totalorder %s899_s28, %s628_s13  ;;  %p635_p9 = scmp.lt.u32.totalorder %s633_s17, %s628_s13 }
  0x41   : > { %p637_p2 = scmp.lt.u32.totalorder %s628_s13, %s899_s28 }
  0x42   : > { %p631_p3 = pnand %p630_p0, %p629_p13  ;;  %p636_p1 = por %p635_p9, %p634_p7 }
  0x44   : > { %p632_p5 = pneg %p631_p3  ;;  %p638_p4 = por %p637_p2, %p636_p1 }
  0x46   : > { %p639_p6 = pnand %p638_p4, %p632_p5 }
  0x48   : > { %642 = shalt.err (!%p639_p6)
}
  0x49   : > { %s643_s29 = scalar_lea.vmem %s906_s7, 128  ;;  %s767_s16 = smov [#allocation2]  }
  0x4a   : > { %p644_p8 = scmp.ne.s32.totalorder %s906_s7, %s643_s29  ;;  %s648_s10 = sshll.u32 %s767_s16, 4  ;;  %s649_s10 = int_to_ptr.vmem [resolvable:$false] %s648_s10 }
  0x4b   : > { %s650_s2 = scalar_lea.vmem %s649_s10, 256  ;;  %p651_p3 = scmp.lt.s32.totalorder %s906_s7, %s649_s10 }
  0x4c   : > { %p646_p11 = pnand %p644_p8, %p630_p0  ;;  %p652_p7 = scmp.lt.s32.totalorder %s650_s2, %s643_s29 }
  0x4e   : > { %p647_p13 = pneg %p646_p11  ;;  %p653_p9 = por %p652_p7, %p651_p3 }
  0x50   : > { %p654_p1 = pnand %p653_p9, %p647_p13 }
  0x52   : > { %657 = shalt.err (!%p654_p1)
}
  0x53   : > { %s1088_s17 = smov 4   ;;  %s1089_s8 = smov 64  }
  0x54   : > { %547 = dma.hbm_to_vmem [thread:$0]  (!%p902_p10), %s899_s28, 128, %s906_s7, %s913_s12, %s1089_s8, %s1089_s8, %s1088_s17  }
  0x55   : > { %s227_s15 = scalar_lea.vmem [#allocation5], %s894_s11  ;;  %s223_s13 = sand.u32 1, %s762_s21  }
  0x56   : > { %s234_s23 = sshll.u32 %s227_s15, 4  ;;  %s948_s6 = scalar_lea.sflag [#allocation6], %s223_s13  ;;  %s946_s23 = int_to_ptr.vmem [resolvable:$true] %s234_s23 }
  0x57   : > { %s658_s29 = scalar_lea.hbm %s911_s27, 128  ;;  %s663_s2 = scalar_lea.hbm %s1062_s1, 512 }
  0x58   : > { %p659_p5 = scmp.ne.s32.totalorder %s911_s27, %s658_s29  ;;  %p664_p6 = scmp.lt.u32.totalorder %s911_s27, %s1062_s1 }
  0x59   : > { %p665_p8 = scmp.lt.u32.totalorder %s663_s2, %s658_s29  ;;  %p667_p13 = scmp.lt.u32.totalorder %s658_s29, %s911_s27 }
  0x5a   : > { %p661_p2 = pnand %p659_p5, %p630_p0 }
  0x5b   : > { %p666_p11 = por %p665_p8, %p664_p6 }
  0x5c   : > { %p662_p4 = pneg %p661_p2 }
  0x5d   : > { %p668_p3 = por %p667_p13, %p666_p11 }
  0x5f   : > { %p669_p7 = pnand %p668_p3, %p662_p4 }
  0x61   : > { %672 = shalt.err (!%p669_p7)
}
  0x62   : > { %s673_s11 = scalar_lea.vmem %s946_s23, 128  ;;  %s768_s28 = smov [#allocation5]  }
  0x63   : > { %p674_p9 = scmp.ne.s32.totalorder %s946_s23, %s673_s11  ;;  %s678_s7 = sshll.u32 %s768_s28, 4  ;;  %s679_s7 = int_to_ptr.vmem [resolvable:$false] %s678_s7 }
  0x64   : > { %s680_s0 = scalar_lea.vmem %s679_s7, 256  ;;  %p681_p2 = scmp.lt.s32.totalorder %s946_s23, %s679_s7 }
  0x65   : > { %p676_p1 = pnand %p674_p9, %p630_p0  ;;  %p682_p6 = scmp.lt.s32.totalorder %s680_s0, %s673_s11 }
  0x67   : > { %p677_p5 = pneg %p676_p1  ;;  %p683_p8 = por %p682_p6, %p681_p2 }
  0x69   : > { %p684_p11 = pnand %p683_p8, %p677_p5 }
  0x6b   : > { %687 = shalt.err (!%p684_p11)
}
  0x6c   : > { %550 = dma.hbm_to_vmem [thread:$0]  (!%p902_p10), %s911_s27, 128, %s946_s23, %s948_s6, %s1089_s8, %s1089_s8, %s1088_s17  }
  0x6d   : > { %p1090_p0 = scmp.ne.s32.totalorder %s1080_s26, 0 }
  0x6e   : > { %s980_s20 = sand.u32 (!%p1090_p0), 1, %s754_s19   ;;  %p1091_p4 = scmp.ne.s32.totalorder (!%p1090_p0), %s1078_s24, 0 }
  0x6f   : > { %246 = sbr.rel (%p1090_p0) target bundleno = 466 (0x1d2), region = 40  ;;  %s983_s12 = sshll.u32 (!%p1090_p0), %s980_s20, 3 }
  0x70   : > { %s249_s14 = scalar_lea.sflag (!%p1090_p0), [#allocation3], %s980_s20  ;;  %s252_s15 = scalar_lea.vmem (!%p1090_p0), [#allocation2], %s983_s12 }
  0x76   : > { %733 = dma.done.wait (%p1091_p4), %s249_s14, 128  }
  0x77   : > { %735 = vsyncadd (%p1091_p4), %s249_s14, 4294967168  ;;  %s257_s26 = sand.u32 1, %s823_s22   ;;  %s261_s17 = scalar_lea.vmem [#allocation5], %s983_s12 }
  0x78   : > { %s258_s27 = scalar_lea.sflag [#allocation6], %s257_s26 }
  0x79   : > { %737 = dma.done.wait (%p1091_p4), %s258_s27, 128  }
  0x7a   : > { %739 = vsyncadd (%p1091_p4), %s258_s27, 4294967168  ;;  %p1092_p10 = scmp.eq.s32.totalorder %s823_s22, 0 }
  0x7c   : > { %741 = dma.done.wait (%p1092_p10), [#allocation6], 128   ;;  %p1093_p13 = pmov %p1092_p10 }
  0x7d   : > { %v519_v0 = vld [vmem:[%s252_s15] sm:$0xff]   ;;  %v523_v1 = vld [vmem:[%s261_s17] sm:$0xff]   ;;  %vm313_vm0 = vcmask 261120   ;;  %vm367_vm1 = vcmask 257024   ;;  %s517_s6 = sshll.u32 %s823_s22, 7  ;;  %s296_s29 = scalar_lea.vmem [#allocation8], %s983_s12 }
  0x7e   : > { %743 = vsyncadd (%p1093_p13), [#allocation6], 4294967168  ;;  %v527_v2 = vld [vmem:[#allocation7] sm:$0xff]   ;;  %v520_v3 = vunpack.c.l.bf16 %v519_v0  ;;  %v524_v4 = vunpack.c.l.bf16 %v523_v1  ;;  %v521_v6 = vunpack.c.h.bf16 %v519_v0  ;;  %v525_v7 = vunpack.c.h.bf16 %v523_v1  ;;  %s384_s16 = sshll.u32 %s296_s29, 4  ;;  %s1016_s11 = scalar_lea.hbm %s1066_s5, %s517_s6  ;;  %s1018_s16 = int_to_ptr.vmem [resolvable:$true] %s384_s16 }
  0x7f   : > { %v528_v5 = vunpack.c.l.bf16 %v527_v2  ;;  %v529_v8 = vunpack.c.h.bf16 %v527_v2  ;;  %v504_v32 = vld [vmem:[%s1064_s3] ss:$0 sm:$0xff]  ;;  %s371_s28 = scalar_lea.sflag [#allocation4], %s980_s20  ;;  %s688_s7 = scalar_lea.vmem %s1018_s16, 128 }
  0x80   : > { %v305_v9 = vadd.f32 %v524_v4, %v520_v3  ;;  %v306_v10 = vadd.f32 %v525_v7, %v521_v6  ;;  %v505_v34 = vld [vmem:[%s1065_s4] ss:$0 sm:$0xff]  ;;  %p689_p3 = scmp.ne.s32.totalorder %s1018_s16, %s688_s7  ;;  %s769_s22 = smov [#allocation8]  }
  0x81   : > { %s692_s0 = sshll.u32 %s769_s22, 4  ;;  %s693_s0 = int_to_ptr.vmem [resolvable:$false] %s692_s0 }
  0x82   : > { %v311_v11 = vadd.f32 %v528_v5, %v305_v9  ;;  %v312_v12 = vadd.f32 %v529_v8, %v306_v10  ;;  %p690_p7 = pnand %p689_p3, %p888_p12  ;;  %s694_s12 = scalar_lea.vmem %s693_s0, 256 }
  0x83   : > { %p695_p1 = scmp.lt.s32.totalorder %s1018_s16, %s693_s0  ;;  %p696_p5 = scmp.lt.s32.totalorder %s694_s12, %s688_s7 }
  0x84   : > { %v314_v13 = vsel %vm313_vm0, %v311_v11, 0.0  ;;  %v317_v14 = vsel %vm313_vm0, %v312_v12, 0.0  ;;  %p691_p9 = pneg %p690_p7 }
  0x85   : > { %315 = vadd.xlane.f32.xlu0 %v314_v13  ;;  %p697_p2 = por %p696_p5, %p695_p1 }
  0x87   : > { %p698_p6 = pnand %p697_p2, %p691_p9 }
  0x89   : > { %318 = vadd.xlane.f32.xlu0 %v317_v14 }
 0x112   : > { %v316_v15 = vpop.xlane.xlu0 %315 }
 0x113   : > { %v321_v16 = vmul.f32 0.03125, %v316_v15 }
 0x115   : > { %v323_v17 = vsub.f32 %v311_v11, %v321_v16 }
 0x116   : > { %v319_v18 = vpop.xlane.xlu0 %318 }
 0x117   : > { %v322_v19 = vmul.f32 0.03125, %v319_v18  ;;  %v325_v20 = vmul.f32 %v323_v17, %v323_v17 }
 0x119   : > { %v324_v21 = vsub.f32 %v312_v12, %v322_v19  ;;  %v327_v22 = vsel %vm313_vm0, %v325_v20, 0.0 }
 0x11a   : > { %328 = vadd.xlane.f32.xlu1 %v327_v22 }
 0x11b   : > { %v326_v23 = vmul.f32 %v324_v21, %v324_v21 }
 0x11d   : > { %v330_v24 = vsel %vm313_vm0, %v326_v23, 0.0 }
 0x11e   : > { %331 = vadd.xlane.f32.xlu1 %v330_v24 }
 0x1a7   : > { %v329_v25 = vpop.xlane.xlu1 %328 }
 0x1a8   : > { %v333_v26 = vmul.f32 0.03125, %v329_v25 }
 0x1aa   : > { %v335_v27 = vadd.f32 1e-12, %v333_v26 }
 0x1ab   : > { %v332_v28 = vpop.xlane.xlu1 %331 }
 0x1ac   : > { %596 = vrsqrt.f32 %v335_v27  ;;  %v334_v29 = vmul.f32 0.03125, %v332_v28 }
 0x1ae   : > { %v336_v30 = vadd.f32 1e-12, %v334_v29 }
 0x1b0   : > { %598 = vrsqrt.f32 %v336_v30 }
 0x1b6   : > { %v597_v31 = vpop.eup %596 }
 0x1b7   : > { %v339_v33 = vmul.f32 %v597_v31, %v323_v17 }
 0x1b9   : > { %v348_v35 = vmul.f32 %v504_v32, %v339_v33 }
 0x1ba   : > { %v599_v36 = vpop.eup %598 }
 0x1bb   : > { %v357_v37 = vadd.f32 %v505_v34, %v348_v35  ;;  %v340_v38 = vmul.f32 %v599_v36, %v324_v21 }
 0x1bd   : > { %v515_v39 = vpack.c.bf16 %v357_v37, %v357_v37  ;;  %v349_v40 = vmul.f32 %v504_v32, %v340_v38 }
 0x1bf   : > { %v358_v41 = vadd.f32 %v505_v34, %v349_v40  ;;  %368 = vst.msk [vmem:[%s296_s29] sm:$0xf] %vm367_vm1, %v515_v39 }
 0x1c1   : > { %v516_v42 = vpack.c.bf16 %v358_v41, %v358_v41 }
 0x1c3   : > { %369 = vst.msk [vmem:[%s296_s29 + $0x4] sm:$0xf] %vm367_vm1, %v516_v42 }
 0x1c4   : > { %701 = shalt.err (!%p698_p6)
}
 0x1c5   : > { %s702_s14 = scalar_lea.hbm %s1016_s11, 128  ;;  %s706_s27 = scalar_lea.hbm %s1066_s5, 512 }
 0x1c6   : > { %p703_p8 = scmp.ne.s32.totalorder %s1016_s11, %s702_s14  ;;  %p707_p4 = scmp.lt.u32.totalorder %s1016_s11, %s1066_s5 }
 0x1c7   : > { %p708_p10 = scmp.lt.u32.totalorder %s706_s27, %s702_s14  ;;  %p710_p3 = scmp.lt.u32.totalorder %s702_s14, %s1016_s11 }
 0x1c8   : > { %p704_p11 = pnand %p703_p8, %p888_p12 }
 0x1c9   : > { %p709_p13 = por %p708_p10, %p707_p4 }
 0x1ca   : > { %p705_p0 = pneg %p704_p11 }
 0x1cb   : > { %p711_p7 = por %p710_p3, %p709_p13 }
 0x1cd   : > { %p712_p9 = pnand %p711_p7, %p705_p0 }
 0x1cf   : > { %715 = shalt.err (!%p712_p9)
}
 0x1d0   : > { %s770_s8 = smov 64   ;;  %s771_s23 = smov 4  }
 0x1d1   : > { %538 = dma.vmem_to_hbm [thread:$0]  (%p888_p12), %s1018_s16, 128, %s1016_s11, %s371_s28, %s770_s8, %s770_s8, %s771_s23  }
 0x1d2 PF: > { %p558_p1 = scmp.ge.s32.totalorder %s762_s21, 2  ;;  %s399_s13 = sand.u32 1, %s750_s18  }
 0x1d3   : > { %p1094_p5 = scmp.ne.s32.totalorder %s1079_s25, 0  ;;  %s400_s6 = scalar_lea.sflag [#allocation4], %s399_s13 }
 0x1d5   : > { %p552_p2 = pnand %p558_p1, %p1094_p5 }
 0x1d7   : > { %745 = dma.done.wait (!%p552_p2), %s400_s6, 128  }
 0x1d8   : > { %747 = vsyncadd (!%p552_p2), %s400_s6, 4294967168  ;;  %s1095_s29 = sld [smem:[#allocation13_spill]]  ;;  %s1096_s20 = sld [smem:[#allocation14_spill]] }
 0x1d9   : > { %p21_p6 = scmp.ge.s32.totalorder %s855_s30, 6   ;;  %s1097_s18 = smov %s754_s19 }
 0x1da   : > { %s1099_s21 = smov %s855_s30 }
 0x1db   :  { %23 = sbr.rel (!%p21_p6) target bundleno = 10 (0xa), region = 102 }
 0x1de   : > { %s1098_s19 = smov %s1095_s29 }
 0x1e2   :  { %405 = vsyncpa [#allocation3], 1 }
 0x1e3   :  { %407 = vsyncpa [#allocation3 + $0x1], 1 }
 0x1e4   :  { %408 = vsyncpa [#allocation6], 1 }
 0x1e5   :  { %410 = vsyncpa [#allocation6 + $0x1], 1 }
 0x1e6   :  { %411 = vsyncpa [#allocation4], 1 }
 0x1e7   :  { %413 = vsyncpa [#allocation4 + $0x1], 1 }

</bundles_post_ra>
